<compile_context>
chip_gen: v6e
topology: v6e:2x2x1
jax: 0.10.0
libtpu: 0.0.40
codegen_flags: <defaults>
</compile_context>

<pallas_src>
import functools

import jax
import jax.numpy as jnp
from jax.experimental import pallas as pl
from jax.experimental.pallas import tpu as pltpu


def _ensemble_kernel(x_ref,     # VMEM (tb, tk)        f32  input tile (cast to bf16 in-kernel)
                     w_ref,     # VMEM (tk, LANES)     bf16 packed weights (M*NC real columns)
                     b_ref,     # VMEM (1, LANES)      f32  packed biases (-1e30 on padded lanes)
                     seg_ref,   # VMEM (LANES, LANES)  f32  same-segment matrix (denominator scatter)
                     proj_ref,  # VMEM (LANES, LANES)  f32  class projection with accuracies folded in
                     out_ref,   # VMEM (tb, 1)         i32  predicted class
                     acc_ref,   # VMEM scratch (tb, LANES) f32  logit accumulator over K
                     *, nc, num_models):
    lanes = w_ref.shape[1]
    k = pl.program_id(1)

    @pl.when(k == 0)
    def _init():
        acc_ref[...] = jnp.zeros_like(acc_ref)

    # One fused lane-dense MXU matmul for all M models on this (batch, K) tile.
    acc_ref[...] += jnp.dot(x_ref[...].astype(jnp.bfloat16), w_ref[...],
                            preferred_element_type=jnp.float32)

    @pl.when(k == pl.num_programs(1) - 1)
    def _finalize():
        neg = jnp.float32(-1e30)
        logits = acc_ref[...] + b_ref[...]          # (tb, lanes); padded lanes ~ -1e30

        # (1, lanes) masks only -> 1 vreg each; broadcast across sublanes is free.
        lane_ids = jax.lax.broadcasted_iota(jnp.int32, (1, lanes), 1)

        # Per-model segment maxima (M small XLU reductions), scattered back per-lane.
        max_scatter = jnp.zeros_like(logits)
        for m in range(num_models):
            lo = m * nc
            in_seg = (lane_ids >= lo) & (lane_ids < lo + nc)                      # (1, lanes)
            mx = jnp.max(jnp.where(in_seg, logits, neg), axis=1, keepdims=True)   # (tb, 1)
            max_scatter = max_scatter + jnp.where(in_seg, mx, jnp.float32(0.0))

        # ONE exp over the whole tile (single EUP pass); padded lanes underflow to 0.
        e = jnp.exp(logits - max_scatter)

        # Per-model softmax denominators scattered per-lane via one segment-sum
        # matmul on the MXU; tiny bump keeps the reciprocal finite on padded lanes
        # (real denominators are >= 1 since the segment max maps to exp(0)=1).
        denom = jnp.dot(e, seg_ref[...], preferred_element_type=jnp.float32)
        denom = denom + jnp.float32(1e-30)
        probs = e * pl.reciprocal(denom, approx=True)          # EUP vrcp slot

        # Weighted soft vote: per-class totals with accuracy weights folded into
        # the projection matrix (MXU); columns >= nc come out as exactly 0.
        votes = jnp.dot(probs, proj_ref[...], preferred_element_type=jnp.float32)

        # First-max-wins argmax over the nc real class columns (torch.argmax).
        valid = lane_ids < nc
        masked = jnp.where(valid, votes, neg)
        maxv = jnp.max(masked, axis=1, keepdims=True)
        cand = jnp.where(masked == maxv, lane_ids, jnp.int32(lanes))
        out_ref[...] = jnp.min(cand, axis=1, keepdims=True)    # (tb, 1) int32


def ensemble_forward(x_nchw, weights, biases, accuracies):
    """x_nchw:     (B, C, H, W) f32
       weights:    (M, D, NC) f32, D = C*H*W  (PyTorch Linear weight transposed to (in, out))
       biases:     (M, 1, NC) f32
       accuracies: (M,) f32
       returns:    (B,) int32 predicted class indices
    """
    B = x_nchw.shape[0]
    M, D, NC = weights.shape
    num_real = M * NC
    lanes = max(128, pl.cdiv(num_real, 128) * 128)   # pack M*NC class cols, pad to 128

    # Batch tile: >= 2 grid steps once B >= 16 so the "parallel" axis shards
    # across v7x's two TensorCores; tiny batches run as one full block.
    if B >= 16:
        tb = min(256, ((pl.cdiv(B, 2) + 7) // 8) * 8)
    else:
        tb = B

    # Feature (K) tile: only tile very large D (bounds x/w VMEM on v7x's 64 MiB);
    # K tile must divide D exactly so no padded-K garbage enters the accumulator.
    tk = D
    if D > 4096:
        for cand in (4096, 2048, 1024, 512, 256, 128):
            if D % cand == 0:
                tk = cand
                break

    # ---- one-time host-side packing (would be offline in deployment) ---------
    x_flat = x_nchw.reshape(B, D)                     # stays f32; cast to bf16 in-kernel
    w_real = jnp.transpose(weights, (1, 0, 2)).reshape(D, num_real).astype(jnp.bfloat16)
    w_packed = jnp.zeros((D, lanes), jnp.bfloat16).at[:, :num_real].set(w_real)
    b_packed = jnp.full((1, lanes), -1e30, jnp.float32).at[:, :num_real].set(
        biases.reshape(1, num_real).astype(jnp.float32))

    lane = jnp.arange(lanes)
    model_of_lane = jnp.where(lane < num_real, lane // NC, -1)
    # seg_mat[l, l'] = 1 iff lanes l and l' are real and belong to the same model.
    seg_mat = ((model_of_lane[:, None] == model_of_lane[None, :])
               & (model_of_lane[:, None] >= 0)).astype(jnp.float32)
    # proj_w[l, c] = accuracies[model(l)] iff lane l is real and (l % NC) == c.
    cls_of_lane = lane % NC
    proj01 = ((lane[:, None] < num_real)
              & (cls_of_lane[:, None] == lane[None, :])).astype(jnp.float32)
    accw_col = jnp.where(lane < num_real,
                         accuracies.astype(jnp.float32)[jnp.minimum(lane // NC, M - 1)],
                         0.0)
    proj_w = proj01 * accw_col[:, None]

    kernel = functools.partial(_ensemble_kernel, nc=NC, num_models=M)

    out = pl.pallas_call(
        kernel,
        out_shape=jax.ShapeDtypeStruct((B, 1), jnp.int32),
        grid=(pl.cdiv(B, tb), pl.cdiv(D, tk)),
        in_specs=[
            pl.BlockSpec((tb, tk), lambda i, k: (i, k)),         # x batch/K tile (f32)
            pl.BlockSpec((tk, lanes), lambda i, k: (k, 0)),      # packed weights
            pl.BlockSpec((1, lanes), lambda i, k: (0, 0)),       # packed biases (resident)
            pl.BlockSpec((lanes, lanes), lambda i, k: (0, 0)),   # segment-sum matrix (resident)
            pl.BlockSpec((lanes, lanes), lambda i, k: (0, 0)),   # weighted class projection (resident)
        ],
        out_specs=pl.BlockSpec((tb, 1), lambda i, k: (i, 0)),
        scratch_shapes=[pltpu.VMEM((tb, lanes), jnp.float32)],
        compiler_params=pltpu.CompilerParams(
            dimension_semantics=("parallel", "arbitrary")),      # batch parallel, K reduction
    )(x_flat, w_packed, b_packed, seg_mat, proj_w)
    return out.reshape(B)


def ensemble_reference(x_nchw, weights, biases, accuracies):
    """Pure-JAX reference mirroring PyTorch Ensemble.forward.
    Matmul operands are cast to bf16 exactly like the kernel so the integer
    argmax comparison is stable; softmax / voting math stays in f32."""
    B = x_nchw.shape[0]
    M, D, NC = weights.shape
    x_flat = x_nchw.reshape(B, D).astype(jnp.bfloat16).astype(jnp.float32)
    w = weights.astype(jnp.bfloat16).astype(jnp.float32)
    logits = jnp.einsum("bd,mdc->mbc", x_flat, w) + biases        # (M, B, NC)
    probs = jnp.exp(jax.nn.log_softmax(logits, axis=-1))          # model outputs exp'd
    votes = (probs * accuracies.reshape(-1, 1, 1)).sum(axis=0)    # (B, NC)
    return jnp.argmax(votes, axis=1).astype(jnp.int32)


if __name__ == "__main__":
    # Small deterministic setup consistent with the module's forward (NCHW in).
    B, C, H, W = 2, 4, 16, 16
    NUM_MODELS = 3
    NUM_CLASSES = 4
    D = C * H * W

    key = jax.random.PRNGKey(0)
    kx, kw, kb, ka = jax.random.split(key, 4)

    x = jax.random.normal(kx, (B, C, H, W), dtype=jnp.float32)
    # Deterministic synthetic "trained" parameters (no checkpoint loading).
    weights = 0.05 * jax.random.normal(kw, (NUM_MODELS, D, NUM_CLASSES),
                                       dtype=jnp.float32)
    biases = 0.01 * jax.random.normal(kb, (NUM_MODELS, 1, NUM_CLASSES),
                                      dtype=jnp.float32)
    accuracies = jax.random.uniform(ka, (NUM_MODELS,), dtype=jnp.float32,
                                    minval=0.5, maxval=1.0)

    preds = jax.block_until_ready(ensemble_forward(x, weights, biases, accuracies))
    ref = jax.block_until_ready(ensemble_reference(x, weights, biases, accuracies))

    assert preds.shape == (B,)
    assert preds.dtype == jnp.int32
    assert bool(jnp.all(preds == ref)), (preds, ref)

    print("KERNEL_OK")
</pallas_src>

<mosaic_0001>
module attributes {stable_mosaic.version = 11 : i64} {
  func.func @_ensemble_kernel(%arg0: i32, %arg1: i32, %arg2: memref<2x1024xf32, #tpu.memory_space<vmem>>, %arg3: memref<1024x128xbf16, #tpu.memory_space<vmem>>, %arg4: memref<1x128xf32, #tpu.memory_space<vmem>>, %arg5: memref<128x128xf32, #tpu.memory_space<vmem>>, %arg6: memref<128x128xf32, #tpu.memory_space<vmem>>, %arg7: memref<2x1xi32, #tpu.memory_space<vmem>>, %arg8: memref<2x128xf32, #tpu.memory_space<vmem>>) attributes {dimension_semantics = [#tpu.dimension_semantics<parallel>, #tpu.dimension_semantics<arbitrary>], iteration_bounds = array<i64: 1, 1>, scalar_prefetch = 0 : i64, scratch_operands = 1 : i64, tpu.core_type = #tpu.core_type<tc>, window_params = [{transform_indices = @transform_0, window_bounds = array<i64: 2, 1024>}, {transform_indices = @transform_1, window_bounds = array<i64: 1024, 128>}, {pipeline_mode = #tpu.pipeline_mode<synchronous>, transform_indices = @transform_2, window_bounds = array<i64: 1, 128>}, {pipeline_mode = #tpu.pipeline_mode<synchronous>, transform_indices = @transform_3, window_bounds = array<i64: 128, 128>}, {pipeline_mode = #tpu.pipeline_mode<synchronous>, transform_indices = @transform_4, window_bounds = array<i64: 128, 128>}, {transform_indices = @transform_5, window_bounds = array<i64: 2, 1>}]} {
    %c0_i32 = arith.constant 0 : i32
    %0 = arith.cmpi eq, %arg1, %c0_i32 : i32
    %1 = arith.extui %0 : i1 to i32
    %c0_i32_0 = arith.constant 0 : i32
    %2 = arith.cmpi ne, %1, %c0_i32_0 : i32
    scf.if %2 {
      %cst_10 = arith.constant 0.000000e+00 : f32
      %13 = vector.broadcast %cst_10 : f32 to vector<2x128xf32>
      %c0_11 = arith.constant 0 : index
      %c0_12 = arith.constant 0 : index
      %14 = vector.load %arg8[%c0_11, %c0_12] : memref<2x128xf32, #tpu.memory_space<vmem>>, vector<2x128xf32>
      tpu.vector_store %arg8[%c0_11, %c0_12], %13 {strides = array<i32>} : memref<2x128xf32, #tpu.memory_space<vmem>>, vector<2x128xf32>,
    } else {
    }
    %c0 = arith.constant 0 : index
    %c0_1 = arith.constant 0 : index
    %3 = vector.load %arg8[%c0, %c0_1] : memref<2x128xf32, #tpu.memory_space<vmem>>, vector<2x128xf32>
    %c0_2 = arith.constant 0 : index
    %c0_3 = arith.constant 0 : index
    %4 = vector.load %arg2[%c0_2, %c0_3] : memref<2x1024xf32, #tpu.memory_space<vmem>>, vector<2x1024xf32>
    %5 = arith.truncf %4 : vector<2x1024xf32> to vector<2x1024xbf16>
    %c0_4 = arith.constant 0 : index
    %c0_5 = arith.constant 0 : index
    %6 = vector.load %arg3[%c0_4, %c0_5] : memref<1024x128xbf16, #tpu.memory_space<vmem>>, vector<1024x128xbf16>
    %cst = arith.constant dense<0.000000e+00> : vector<2x128xf32>
    %7 = tpu.matmul %5, %6, %cst {dimension_numbers = #tpu.dot_dimension_numbers<[1], [0], [0], [1], [0, 0, 1, 1], [], []>} : vector<2x1024xbf16>, vector<1024x128xbf16>, vector<2x128xf32> -> vector<2x128xf32>
    %8 = arith.addf %3, %7 : vector<2x128xf32>
    %c0_6 = arith.constant 0 : index
    %c0_7 = arith.constant 0 : index
    %9 = vector.load %arg8[%c0_6, %c0_7] : memref<2x128xf32, #tpu.memory_space<vmem>>, vector<2x128xf32>
    tpu.vector_store %arg8[%c0_6, %c0_7], %8 {strides = array<i32>} : memref<2x128xf32, #tpu.memory_space<vmem>>, vector<2x128xf32>,
    %c0_i32_8 = arith.constant 0 : i32
    %10 = arith.cmpi eq, %arg1, %c0_i32_8 : i32
    %11 = arith.extui %10 : i1 to i32
    %c0_i32_9 = arith.constant 0 : i32
    %12 = arith.cmpi ne, %11, %c0_i32_9 : i32
    scf.if %12 {
      %c0_10 = arith.constant 0 : index
      %c0_11 = arith.constant 0 : index
      %13 = vector.load %arg8[%c0_10, %c0_11] : memref<2x128xf32, #tpu.memory_space<vmem>>, vector<2x128xf32>
      %c0_12 = arith.constant 0 : index
      %c0_13 = arith.constant 0 : index
      %14 = vector.load %arg4[%c0_12, %c0_13] : memref<1x128xf32, #tpu.memory_space<vmem>>, vector<1x128xf32>
      %15 = vector.broadcast %14 : vector<1x128xf32> to vector<2x128xf32>
      %16 = arith.addf %13, %15 : vector<2x128xf32>
      %17 = tpu.iota {dimensions = array<i32: 1>} : vector<1x128xi32>
      %cst_14 = arith.constant 0.000000e+00 : f32
      %18 = vector.broadcast %cst_14 : f32 to vector<2x128xf32>
      %c0_i32_15 = arith.constant 0 : i32
      %19 = vector.broadcast %c0_i32_15 : i32 to vector<1x128xi32>
      %20 = arith.cmpi sge, %17, %19 : vector<1x128xi32>
      %c4_i32 = arith.constant 4 : i32
      %21 = vector.broadcast %c4_i32 : i32 to vector<1x128xi32>
      %22 = arith.cmpi slt, %17, %21 : vector<1x128xi32>
      %23 = arith.andi %20, %22 : vector<1x128xi1>
      %cst_16 = arith.constant -1.000000e+30 : f32
      %24 = vector.shape_cast %23 : vector<1x128xi1> to vector<1x128xi1>
      %25 = vector.broadcast %24 : vector<1x128xi1> to vector<2x128xi1>
      %26 = vector.broadcast %cst_16 : f32 to vector<2x128xf32>
      %27 = arith.select %25, %16, %26 : vector<2x128xi1>, vector<2x128xf32>
      %cst_17 = arith.constant dense<0xFF800000> : vector<2xf32>
      %28 = vector.multi_reduction <maximumf>, %27, %cst_17 [1] : vector<2x128xf32> to vector<2xf32>
      %29 = vector.shape_cast %28 : vector<2xf32> to vector<2x1xf32>
      %cst_18 = arith.constant 0.000000e+00 : f32
      %30 = vector.shape_cast %23 : vector<1x128xi1> to vector<1x128xi1>
      %31 = vector.broadcast %30 : vector<1x128xi1> to vector<2x128xi1>
      %32 = vector.shape_cast %29 : vector<2x1xf32> to vector<2x1xf32>
      %33 = vector.broadcast %32 : vector<2x1xf32> to vector<2x128xf32>
      %34 = vector.broadcast %cst_18 : f32 to vector<2x128xf32>
      %35 = arith.select %31, %33, %34 : vector<2x128xi1>, vector<2x128xf32>
      %36 = arith.addf %18, %35 : vector<2x128xf32>
      %c4_i32_19 = arith.constant 4 : i32
      %37 = vector.broadcast %c4_i32_19 : i32 to vector<1x128xi32>
      %38 = arith.cmpi sge, %17, %37 : vector<1x128xi32>
      %c8_i32 = arith.constant 8 : i32
      %39 = vector.broadcast %c8_i32 : i32 to vector<1x128xi32>
      %40 = arith.cmpi slt, %17, %39 : vector<1x128xi32>
      %41 = arith.andi %38, %40 : vector<1x128xi1>
      %cst_20 = arith.constant -1.000000e+30 : f32
      %42 = vector.shape_cast %41 : vector<1x128xi1> to vector<1x128xi1>
      %43 = vector.broadcast %42 : vector<1x128xi1> to vector<2x128xi1>
      %44 = vector.broadcast %cst_20 : f32 to vector<2x128xf32>
      %45 = arith.select %43, %16, %44 : vector<2x128xi1>, vector<2x128xf32>
      %cst_21 = arith.constant dense<0xFF800000> : vector<2xf32>
      %46 = vector.multi_reduction <maximumf>, %45, %cst_21 [1] : vector<2x128xf32> to vector<2xf32>
      %47 = vector.shape_cast %46 : vector<2xf32> to vector<2x1xf32>
      %cst_22 = arith.constant 0.000000e+00 : f32
      %48 = vector.shape_cast %41 : vector<1x128xi1> to vector<1x128xi1>
      %49 = vector.broadcast %48 : vector<1x128xi1> to vector<2x128xi1>
      %50 = vector.shape_cast %47 : vector<2x1xf32> to vector<2x1xf32>
      %51 = vector.broadcast %50 : vector<2x1xf32> to vector<2x128xf32>
      %52 = vector.broadcast %cst_22 : f32 to vector<2x128xf32>
      %53 = arith.select %49, %51, %52 : vector<2x128xi1>, vector<2x128xf32>
      %54 = arith.addf %36, %53 : vector<2x128xf32>
      %c8_i32_23 = arith.constant 8 : i32
      %55 = vector.broadcast %c8_i32_23 : i32 to vector<1x128xi32>
      %56 = arith.cmpi sge, %17, %55 : vector<1x128xi32>
      %c12_i32 = arith.constant 12 : i32
      %57 = vector.broadcast %c12_i32 : i32 to vector<1x128xi32>
      %58 = arith.cmpi slt, %17, %57 : vector<1x128xi32>
      %59 = arith.andi %56, %58 : vector<1x128xi1>
      %cst_24 = arith.constant -1.000000e+30 : f32
      %60 = vector.shape_cast %59 : vector<1x128xi1> to vector<1x128xi1>
      %61 = vector.broadcast %60 : vector<1x128xi1> to vector<2x128xi1>
      %62 = vector.broadcast %cst_24 : f32 to vector<2x128xf32>
      %63 = arith.select %61, %16, %62 : vector<2x128xi1>, vector<2x128xf32>
      %cst_25 = arith.constant dense<0xFF800000> : vector<2xf32>
      %64 = vector.multi_reduction <maximumf>, %63, %cst_25 [1] : vector<2x128xf32> to vector<2xf32>
      %65 = vector.shape_cast %64 : vector<2xf32> to vector<2x1xf32>
      %cst_26 = arith.constant 0.000000e+00 : f32
      %66 = vector.shape_cast %59 : vector<1x128xi1> to vector<1x128xi1>
      %67 = vector.broadcast %66 : vector<1x128xi1> to vector<2x128xi1>
      %68 = vector.shape_cast %65 : vector<2x1xf32> to vector<2x1xf32>
      %69 = vector.broadcast %68 : vector<2x1xf32> to vector<2x128xf32>
      %70 = vector.broadcast %cst_26 : f32 to vector<2x128xf32>
      %71 = arith.select %67, %69, %70 : vector<2x128xi1>, vector<2x128xf32>
      %72 = arith.addf %54, %71 : vector<2x128xf32>
      %73 = arith.subf %16, %72 : vector<2x128xf32>
      %74 = math.exp %73 : vector<2x128xf32>
      %c0_27 = arith.constant 0 : index
      %c0_28 = arith.constant 0 : index
      %75 = vector.load %arg5[%c0_27, %c0_28] : memref<128x128xf32, #tpu.memory_space<vmem>>, vector<128x128xf32>
      %cst_29 = arith.constant dense<0.000000e+00> : vector<2x128xf32>
      %76 = tpu.matmul %74, %75, %cst_29 {dimension_numbers = #tpu.dot_dimension_numbers<[1], [0], [0], [1], [0, 0, 1, 1], [], []>} : vector<2x128xf32>, vector<128x128xf32>, vector<2x128xf32> -> vector<2x128xf32>
      %cst_30 = arith.constant 1.000000e-30 : f32
      %77 = vector.broadcast %cst_30 : f32 to vector<2x128xf32>
      %78 = arith.addf %76, %77 : vector<2x128xf32>
      %79 = tpu.reciprocal %78 {approx = true} : vector<2x128xf32> -> vector<2x128xf32>
      %80 = arith.mulf %74, %79 : vector<2x128xf32>
      %c0_31 = arith.constant 0 : index
      %c0_32 = arith.constant 0 : index
      %81 = vector.load %arg6[%c0_31, %c0_32] : memref<128x128xf32, #tpu.memory_space<vmem>>, vector<128x128xf32>
      %cst_33 = arith.constant dense<0.000000e+00> : vector<2x128xf32>
      %82 = tpu.matmul %80, %81, %cst_33 {dimension_numbers = #tpu.dot_dimension_numbers<[1], [0], [0], [1], [0, 0, 1, 1], [], []>} : vector<2x128xf32>, vector<128x128xf32>, vector<2x128xf32> -> vector<2x128xf32>
      %c4_i32_34 = arith.constant 4 : i32
      %83 = vector.broadcast %c4_i32_34 : i32 to vector<1x128xi32>
      %84 = arith.cmpi slt, %17, %83 : vector<1x128xi32>
      %cst_35 = arith.constant -1.000000e+30 : f32
      %85 = vector.shape_cast %84 : vector<1x128xi1> to vector<1x128xi1>
      %86 = vector.broadcast %85 : vector<1x128xi1> to vector<2x128xi1>
      %87 = vector.broadcast %cst_35 : f32 to vector<2x128xf32>
      %88 = arith.select %86, %82, %87 : vector<2x128xi1>, vector<2x128xf32>
      %cst_36 = arith.constant dense<0xFF800000> : vector<2xf32>
      %89 = vector.multi_reduction <maximumf>, %88, %cst_36 [1] : vector<2x128xf32> to vector<2xf32>
      %90 = vector.shape_cast %89 : vector<2xf32> to vector<2x1xf32>
      %91 = vector.broadcast %90 : vector<2x1xf32> to vector<2x128xf32>
      %92 = arith.cmpf oeq, %88, %91 : vector<2x128xf32>
      %c128_i32 = arith.constant 128 : i32
      %93 = vector.shape_cast %17 : vector<1x128xi32> to vector<1x128xi32>
      %94 = vector.broadcast %93 : vector<1x128xi32> to vector<2x128xi32>
      %95 = vector.broadcast %c128_i32 : i32 to vector<2x128xi32>
      %96 = arith.select %92, %94, %95 : vector<2x128xi1>, vector<2x128xi32>
      %cst_37 = arith.constant dense<2147483647> : vector<2xi32>
      %97 = vector.multi_reduction <minsi>, %96, %cst_37 [1] : vector<2x128xi32> to vector<2xi32>
      %98 = vector.shape_cast %97 : vector<2xi32> to vector<2x1xi32>
      %c0_38 = arith.constant 0 : index
      %c0_39 = arith.constant 0 : index
      %99 = vector.load %arg7[%c0_38, %c0_39] : memref<2x1xi32, #tpu.memory_space<vmem>>, vector<2x1xi32>
      tpu.vector_store %arg7[%c0_38, %c0_39], %98 {strides = array<i32>} : memref<2x1xi32, #tpu.memory_space<vmem>>, vector<2x1xi32>,
    } else {
    }
    return
  }
  func.func @transform_0(%arg0: i32, %arg1: i32) -> (i32, i32) {
    %c0_i32 = arith.constant 0 : i32
    return %arg0, %arg1 : i32, i32
  }
  func.func @transform_1(%arg0: i32, %arg1: i32) -> (i32, i32) {
    %c0_i32 = arith.constant 0 : i32
    %c0_i32_0 = arith.constant 0 : i32
    return %arg1, %c0_i32 : i32, i32
  }
  func.func @transform_2(%arg0: i32, %arg1: i32) -> (i32, i32) {
    %c0_i32 = arith.constant 0 : i32
    %c0_i32_0 = arith.constant 0 : i32
    %c0_i32_1 = arith.constant 0 : i32
    return %c0_i32, %c0_i32_0 : i32, i32
  }
  func.func @transform_3(%arg0: i32, %arg1: i32) -> (i32, i32) {
    %c0_i32 = arith.constant 0 : i32
    %c0_i32_0 = arith.constant 0 : i32
    %c0_i32_1 = arith.constant 0 : i32
    return %c0_i32, %c0_i32_0 : i32, i32
  }
  func.func @transform_4(%arg0: i32, %arg1: i32) -> (i32, i32) {
    %c0_i32 = arith.constant 0 : i32
    %c0_i32_0 = arith.constant 0 : i32
    %c0_i32_1 = arith.constant 0 : i32
    return %c0_i32, %c0_i32_0 : i32, i32
  }
  func.func @transform_5(%arg0: i32, %arg1: i32) -> (i32, i32) {
    %c0_i32 = arith.constant 0 : i32
    %c0_i32_0 = arith.constant 0 : i32
    return %arg0, %c0_i32 : i32, i32
  }
}

</mosaic_0001>

<bundles_post_ra>
// kernel: tpu_custom_call.1
= control target key start
LH: loop header
LB: loop body
LE: loop exit
PB: predicated region body
PF: predicated region fallthrough
CT: control target
= control target key end

     0   :  { %10 = vsyncpa [#allocation4], 0  ;;  %s1632_s0 = inlined_call_operand.hbm [shape: f32[2,1024], index: 0, kind: input, shape index: {}]   ;;  %s1633_s1 = inlined_call_operand.hbm [shape: bf16[1024,128], index: 1, kind: input, shape index: {}]   ;;  %s1634_s2 = inlined_call_operand.vmem [shape: f32[1,128], index: 2, kind: input, shape index: {}]   ;;  %s1635_s3 = inlined_call_operand.hbm [shape: f32[128,128], index: 3, kind: input, shape index: {}]   ;;  %s1636_s4 = inlined_call_operand.hbm [shape: f32[128,128], index: 4, kind: input, shape index: {}]   ;;  %s1637_s5 = inlined_call_operand.vmem [shape: s32[2,1], index: 5, kind: output, shape index: {}]  }
   0x1   :  { %11 = vsyncpa [#allocation6], 0 }
   0x2   :  { %12 = vsyncpa [#allocation9], 0  ;;  %s1489_s18 = smov [#allocation5]  }
   0x3   :  { %s28_s19 = sshll.u32 %s1489_s18, 4  ;;  %s29_s19 = int_to_ptr.vmem [resolvable:$true] %s28_s19 }
   0x4   :  { %s1411_s20 = scalar_lea.vmem %s29_s19, 8192  ;;  %p1416_p1 = scmp.lt.s32.totalorder %s29_s19, %s29_s19 }
   0x5   :  { %p1412_p0 = scmp.ne.s32.totalorder %s29_s19, %s1411_s20  ;;  %p1417_p2 = scmp.lt.s32.totalorder %s1411_s20, %s1411_s20 }
   0x7   :  { %p1418_p3 = por %p1417_p2, %p1416_p1 }
   0x9   :  { %p1419_p4 = pnand %p1418_p3, %p1412_p0 }
   0xb   :  { %1422 = shalt.err (!%p1419_p4)
}
   0xc   :  { %s1490_s21 = smov 64   ;;  %s1491_s22 = smov 4  }
   0xd   :  { %34 = dma.hbm_to_vmem [thread:$0]  %s1633_s1, 8192, %s29_s19, [#allocation6], %s1490_s21, %s1490_s21, %s1491_s22  }
   0xe   :  { %s1492_s25 = smov [#allocation3]   ;;  %s1493_s27 = smov [#allocation7]  }
   0xf   :  { %s19_s26 = sshll.u32 %s1492_s25, 4  ;;  %s42_s28 = sshll.u32 %s1493_s27, 4  ;;  %s20_s26 = int_to_ptr.vmem [resolvable:$true] %s19_s26  ;;  %s43_s28 = int_to_ptr.vmem [resolvable:$true] %s42_s28 }
  0x10   :  { %s1431_s29 = scalar_lea.vmem %s20_s26, 256  ;;  %p1436_p6 = scmp.lt.s32.totalorder %s20_s26, %s20_s26 }
  0x11   :  { %p1432_p5 = scmp.ne.s32.totalorder %s20_s26, %s1431_s29  ;;  %p1437_p7 = scmp.lt.s32.totalorder %s1431_s29, %s1431_s29 }
  0x13   :  { %p1438_p8 = por %p1437_p7, %p1436_p6 }
  0x15   :  { %p1439_p9 = pnand %p1438_p8, %p1432_p5 }
  0x17   :  { %1442 = shalt.err (!%p1439_p9)
}
  0x18   :  { %22 = dma.hbm_to_vmem [thread:$0]  %s1632_s0, 256, %s20_s26, [#allocation4]  }
  0x19   :  { %s1451_s7 = scalar_lea.vmem %s43_s28, 2048  ;;  %p1456_p11 = scmp.lt.s32.totalorder %s43_s28, %s43_s28 }
  0x1a   :  { %p1452_p10 = scmp.ne.s32.totalorder %s43_s28, %s1451_s7  ;;  %p1457_p12 = scmp.lt.s32.totalorder %s1451_s7, %s1451_s7 }
  0x1c   :  { %p1458_p13 = por %p1457_p12, %p1456_p11 }
  0x1e   :  { %p1459_p0 = pnand %p1458_p13, %p1452_p10 }
  0x20   :  { %1462 = shalt.err (!%p1459_p0)
}
  0x21   :  { %s1494_s1 = smov 128   ;;  %s1495_s8 = smov 8  }
  0x22   :  { %48 = dma.hbm_to_vmem [thread:$0]  %s1635_s3, 2048, %s43_s28, [#allocation6], %s1494_s1, %s1494_s1, %s1495_s8  }
  0x23   :  { %s1496_s11 = smov [#allocation8]  }
  0x24   :  { %s54_s12 = sshll.u32 %s1496_s11, 4  ;;  %s55_s12 = int_to_ptr.vmem [resolvable:$true] %s54_s12 }
  0x25   :  { %s1471_s13 = scalar_lea.vmem %s55_s12, 2048  ;;  %p1476_p2 = scmp.lt.s32.totalorder %s55_s12, %s55_s12 }
  0x26   :  { %p1472_p1 = scmp.ne.s32.totalorder %s55_s12, %s1471_s13  ;;  %p1477_p3 = scmp.lt.s32.totalorder %s1471_s13, %s1471_s13 }
  0x28   :  { %p1478_p4 = por %p1477_p3, %p1476_p2 }
  0x2a   :  { %p1479_p5 = pnand %p1478_p4, %p1472_p1 }
  0x2c   :  { %1482 = shalt.err (!%p1479_p5)
}
  0x2d   :  { %60 = dma.hbm_to_vmem [thread:$0]  %s1636_s4, 2048, %s55_s12, [#allocation9], %s1494_s1, %s1494_s1, %s1495_s8  }
  0x2e   :  { %1483 = dma.done.wait [#allocation4], 256  }
  0x2f   :  { %1484 = vsyncadd [#allocation4], 4294967040 }
  0x30   :  { %1485 = dma.done.wait [#allocation6], 10240  }
  0x31   :  { %1486 = vsyncadd [#allocation6], 4294957056 }
  0x32   :  { %1487 = dma.done.wait [#allocation9], 2048  }
  0x33   :  { %1488 = vsyncadd [#allocation9], 4294965248  ;;  %v1333_v0 = vld [vmem:[#allocation5 + $0x78] sm:$0xff]   ;;  %v1337_v4 = vld [vmem:[#allocation5 + $0x70] sm:$0xff]   ;;  %v1497_v22 = vmov 1983009808   ;;  %v88_v24 = vlaneseq }
  0x34   :  { %v1334_v1 = vld [vmem:[#allocation5 + $0xf8] sm:$0xff]   ;;  %1130 = vmatprep.subr.bf16.mxu0 %v1333_v0  ;;  %v1338_v5 = vld [vmem:[#allocation5 + $0xf0] sm:$0xff]   ;;  %v1341_v8 = vld [vmem:[#allocation5 + $0x68] sm:$0xff]   ;;  %v86_v23 = vunpack.c.l.s4 %v1497_v22  ;;  %vm828_vm6 = vcmask 1041408   ;;  %vm1499_vm8 = vmmov 0   ;;  %vm1056_vm11 = vcmask 1024  }
  0x35   :  { %v1335_v2 = vld [vmem:[#allocation5 + $0x38] sm:$0xff]   ;;  %1152 = vmatprep.subr.bf16.mxu1 %v1334_v1  ;;  %v1339_v6 = vld [vmem:[#allocation5 + $0x30] sm:$0xff]   ;;  %v1342_v9 = vld [vmem:[#allocation5 + $0xe8] sm:$0xff]   ;;  %v89_v30 = vshrl.u32 %v88_v24, 7 }
  0x36   :  { %v1336_v3 = vld [vmem:[#allocation5 + $0xb8] sm:$0xff]   ;;  %1131 = vmatpush3.bf16.msra.mxu0 %v1335_v2  ;;  %v1340_v7 = vld [vmem:[#allocation5 + $0xb0] sm:$0xff]   ;;  %v1343_v10 = vld [vmem:[#allocation5 + $0x28] sm:$0xff]   ;;  %v87_v29 = vunpack.c.0.s8 %v86_v23 }
  0x37   :  { %1153 = vmatpush3.bf16.msra.mxu1 %v1336_v3  ;;  %1132 = vmatprep.subr.bf16.mxu0 %v1337_v4  ;;  %v1344_v11 = vld [vmem:[#allocation5 + $0xa8] sm:$0xff]   ;;  %v1345_v12 = vld [vmem:[#allocation5 + $0x60] sm:$0xff]   ;;  %v1349_v16 = vld [vmem:[#allocation5 + $0x58] sm:$0xff]  }
  0x38   :  { %1154 = vmatprep.subr.bf16.mxu1 %v1338_v5  ;;  %v1346_v13 = vld [vmem:[#allocation5 + $0xe0] sm:$0xff]   ;;  %v1350_v17 = vld [vmem:[#allocation5 + $0xd8] sm:$0xff]   ;;  %v1353_v20 = vld [vmem:[#allocation5 + $0x50] sm:$0xff]   ;;  %v1543_v35 = vsub.s32 %v87_v29, %v89_v30 }
  0x39   :  { %v1347_v14 = vld [vmem:[#allocation5 + $0x20] sm:$0xff]   ;;  %v1351_v18 = vld [vmem:[#allocation5 + $0x18] sm:$0xff]   ;;  %v1354_v21 = vld [vmem:[#allocation5 + $0xd0] sm:$0xff]  }
  0x3a   :  { %1133 = vmatpush3.bf16.msra.mxu0 %v1339_v6  ;;  %v1348_v15 = vld [vmem:[#allocation5 + $0xa0] sm:$0xff]   ;;  %v1352_v19 = vld [vmem:[#allocation5 + $0x98] sm:$0xff]   ;;  %v1355_v25 = vld [vmem:[#allocation5 + $0x10] sm:$0xff]  }
  0x3b   :  { %1155 = vmatpush3.bf16.msra.mxu1 %v1340_v7  ;;  %1134 = vmatprep.subr.bf16.mxu0 %v1341_v8  ;;  %v1356_v26 = vld [vmem:[#allocation5 + $0x90] sm:$0xff]   ;;  %v1357_v27 = vld [vmem:[#allocation5 + $0x48] sm:$0xff]   ;;  %v1361_v33 = vld [vmem:[#allocation5 + $0x40] sm:$0xff]  }
  0x3c   :  { %1156 = vmatprep.subr.bf16.mxu1 %v1342_v9  ;;  %v1358_v28 = vld [vmem:[#allocation5 + $0xc8] sm:$0xff]   ;;  %v1362_v34 = vld [vmem:[#allocation5 + $0xc0] sm:$0xff]   ;;  %v80_v38 = vld [vmem:[#allocation3] sm:$0xff] }
  0x3d   :  { %v1359_v31 = vld [vmem:[#allocation5 + $0x8] sm:$0xff]   ;;  %v1363_v36 = vld [vmem:[#allocation5] sm:$0xff]   ;;  %v91_v39 = vrot.slane %v80_v38, %v1543_v35  ;;  %v84_v40 = vcombine.high %v80_v38, %v80_v38  ;;  %v1366_v41 = vld [vmem:[#allocation5 + $0x178] sm:$0xff]  }
  0x3e   :  { %1135 = vmatpush3.bf16.msra.mxu0 %v1343_v10  ;;  %v1360_v32 = vld [vmem:[#allocation5 + $0x88] sm:$0xff]   ;;  %v1364_v37 = vld [vmem:[#allocation5 + $0x80] sm:$0xff]   ;;  %v1367_v42 = vld [vmem:[#allocation5 + $0x1f8] sm:$0xff]  }
  0x3f   :  { %1157 = vmatpush3.bf16.msra.mxu1 %v1344_v11  ;;  %1136 = vmatprep.subr.bf16.mxu0 %v1345_v12  ;;  %v99_v43 = vcombine.high %v91_v39, %v91_v39  ;;  %v98_v44 = vrot.slane %v84_v40, %v1543_v35  ;;  %v126_v45 = vpack.c.bf16 %v91_v39, %v91_v39  ;;  %v1368_v48 = vld [vmem:[#allocation5 + $0x138] sm:$0xff]   ;;  %v1370_v50 = vld [vmem:[#allocation5 + $0x170] sm:$0xff]   ;;  %v1374_v55 = vld [vmem:[#allocation5 + $0x168] sm:$0xff]  }
  0x40   :  { %1158 = vmatprep.subr.bf16.mxu1 %v1346_v13  ;;  %v1369_v52 = vld [vmem:[#allocation5 + $0x1b8] sm:$0xff]   ;;  %v1371_v53 = vld [vmem:[#allocation5 + $0x1f0] sm:$0xff]   ;;  %v1375_v57 = vld [vmem:[#allocation5 + $0x1e8] sm:$0xff]  }
  0x41   :  { %v127_v46 = vpack.c.bf16 %v99_v43, %v99_v43  ;;  %v100_v47 = vcombine.high %v98_v44, %v98_v44  ;;  %v128_v49 = vpack.c.bf16 %v98_v44, %v98_v44  ;;  %v1372_v54 = vld [vmem:[#allocation5 + $0x130] sm:$0xff]   ;;  %v1376_v58 = vld [vmem:[#allocation5 + $0x128] sm:$0xff]   ;;  %v1378_v59 = vld [vmem:[#allocation5 + $0x160] sm:$0xff]  }
  0x42   :  { %1137 = vmatpush3.bf16.msra.mxu0 %v1347_v14  ;;  %v1373_v56 = vld [vmem:[#allocation5 + $0x1b0] sm:$0xff]   ;;  %v1377_v60 = vld [vmem:[#allocation5 + $0x1a8] sm:$0xff]   ;;  %v1379_v61 = vld [vmem:[#allocation5 + $0x1e0] sm:$0xff]  }
  0x43   :  { %1159 = vmatpush3.bf16.msra.mxu1 %v1348_v15  ;;  %1138 = vmatprep.subr.bf16.mxu0 %v1349_v16  ;;  %v129_v51 = vpack.c.bf16 %v100_v47, %v100_v47  ;;  %v1380_v62 = vld [vmem:[#allocation5 + $0x120] sm:$0xff]   ;;  %v1382_v63 = vld [vmem:[#allocation5 + $0x158] sm:$0xff]   ;;  %v1386_v3 = vld [vmem:[#allocation5 + $0x150] sm:$0xff]  }
  0x44   :  { %1160 = vmatprep.subr.bf16.mxu1 %v1350_v17  ;;  %678 = vmatprep.mubr.bf16.mxu0 %v127_v46  ;;  %v1381_v0 = vld [vmem:[#allocation5 + $0x1a0] sm:$0xff]   ;;  %v1383_v1 = vld [vmem:[#allocation5 + $0x1d8] sm:$0xff]   ;;  %v1387_v5 = vld [vmem:[#allocation5 + $0x1d0] sm:$0xff]  }
  0x45   :  { %718 = vmatprep.mubr.bf16.mxu1 %v129_v51  ;;  %v1384_v2 = vld [vmem:[#allocation5 + $0x118] sm:$0xff]   ;;  %v1388_v6 = vld [vmem:[#allocation5 + $0x110] sm:$0xff]   ;;  %v1390_v7 = vld [vmem:[#allocation5 + $0x148] sm:$0xff]  }
  0x46   :  { %1139 = vmatpush3.bf16.msra.mxu0 %v1351_v18  ;;  %v1385_v4 = vld [vmem:[#allocation5 + $0x198] sm:$0xff]   ;;  %v1389_v8 = vld [vmem:[#allocation5 + $0x190] sm:$0xff]   ;;  %v1391_v9 = vld [vmem:[#allocation5 + $0x1c8] sm:$0xff]  }
  0x47   :  { %1161 = vmatpush3.bf16.msra.mxu1 %v1352_v19  ;;  %1140 = vmatprep.subr.bf16.mxu0 %v1353_v20  ;;  %v1392_v10 = vld [vmem:[#allocation5 + $0x108] sm:$0xff]   ;;  %v1394_v11 = vld [vmem:[#allocation5 + $0x140] sm:$0xff]   ;;  %v81_v14 = vld [vmem:[#allocation3 + $0x8] sm:$0xff] }
  0x48   :  { %1162 = vmatprep.subr.bf16.mxu1 %v1354_v21  ;;  %v1393_v12 = vld [vmem:[#allocation5 + $0x188] sm:$0xff]   ;;  %v1395_v13 = vld [vmem:[#allocation5 + $0x1c0] sm:$0xff]   ;;  %v108_v16 = vrot.slane %v81_v14, %v1543_v35  ;;  %v101_v17 = vcombine.high %v81_v14, %v81_v14  ;;  %v873_v29 = vld [vmem:[#allocation7 + $0x70] sm:$0xff] }
  0x49   :  { %v1396_v15 = vld [vmem:[#allocation5 + $0x100] sm:$0xff]   ;;  %v860_v14 = vld [vmem:[#allocation7 + $0x8] sm:$0xff] }
  0x4a   :  { %1141 = vmatpush3.bf16.msra.mxu0 %v1355_v25  ;;  %v1397_v18 = vld [vmem:[#allocation5 + $0x180] sm:$0xff]   ;;  %v116_v19 = vcombine.high %v108_v16, %v108_v16  ;;  %v115_v20 = vrot.slane %v101_v17, %v1543_v35  ;;  %v130_v21 = vpack.c.bf16 %v108_v16, %v108_v16  ;;  %v962_v16 = vld [vmem:[#allocation8 + $0x78] sm:$0xff]  ;;  %v961_v17 = vld [vmem:[#allocation8 + $0x70] sm:$0xff] }
  0x4b   :  { %1163 = vmatpush3.bf16.msra.mxu1 %v1356_v26  ;;  %1142 = vmatprep.subr.bf16.mxu0 %v1357_v27  ;;  %v1498_v27 = vmov 0.0  }
  0x4c   :  { %1164 = vmatprep.subr.bf16.mxu1 %v1358_v28  ;;  %v131_v22 = vpack.c.bf16 %v116_v19, %v116_v19  ;;  %v117_v23 = vcombine.high %v115_v20, %v115_v20  ;;  %v132_v25 = vpack.c.bf16 %v115_v20, %v115_v20  ;;  %78 = vst [vmem:[#allocation2] sm:$0x3] %v1498_v27  ;;  %v874_v28 = vld [vmem:[#allocation7 + $0x78] sm:$0xff]  ;;  %v959_v19 = vld [vmem:[#allocation8 + $0x60] sm:$0xff] }
  0x4d   :  { %v958_v20 = vld [vmem:[#allocation8 + $0x58] sm:$0xff] }
  0x4e   :  { %1143 = vmatpush3.bf16.msra.mxu0 %v1359_v31  ;;  %v133_v26 = vpack.c.bf16 %v117_v23, %v117_v23 }
  0x4f   :  { %1165 = vmatpush3.bf16.msra.mxu1 %v1360_v32  ;;  %1144 = vmatprep.subr.bf16.mxu0 %v1361_v33 }
  0x50   :  { %1166 = vmatprep.subr.bf16.mxu1 %v1362_v34 }
  0x52   :  { %1145 = vmatpush3.bf16.msra.mxu0 %v1363_v36 }
  0x53   :  { %1167 = vmatpush3.bf16.msra.mxu1 %v1364_v37  ;;  %1174 = vmatprep.subr.bf16.mxu0 %v1366_v41 }
  0x54   :  { %1196 = vmatprep.subr.bf16.mxu1 %v1367_v42 }
  0x55   :  { %679 = vmatmul.mubr.bf16.vlgmr.msra.gmra.mxu0 %v126_v45 }
  0x56   :  { %1175 = vmatpush3.bf16.msra.mxu0 %v1368_v48  ;;  %719 = vmatmul.mubr.bf16.vlgmr.msra.gmra.mxu1 %v128_v49  ;;  %v79_v49 = vld [vmem:[#allocation2] sm:$0x3] }
  0x57   :  { %1176 = vmatprep.subr.bf16.mxu0 %v1370_v50  ;;  %1197 = vmatpush3.bf16.msra.mxu1 %v1369_v52 }
  0x58   :  { %1198 = vmatprep.subr.bf16.mxu1 %v1371_v53  ;;  %758 = vmatprep.mubr.bf16.mxu0 %v131_v22 }
  0x59   :  { %798 = vmatprep.mubr.bf16.mxu1 %v133_v26 }
  0x5a   :  { %1177 = vmatpush3.bf16.msra.mxu0 %v1372_v54 }
  0x5b   :  { %1178 = vmatprep.subr.bf16.mxu0 %v1374_v55  ;;  %1199 = vmatpush3.bf16.msra.mxu1 %v1373_v56  ;;  %v1555_v55 = vand.u32 127, %v88_v24  ;;  %v1129_v56 = vld [vmem:[%s1634_s2] ss:$0 sm:$0xff] }
  0x5c   :  { %1200 = vmatprep.subr.bf16.mxu1 %v1375_v57 }
  0x5d   :  { %vm845_vm0 = vcmp.ge.s32.totalorder %v1555_v55, 8  ;;  %vm846_vm1 = vcmp.lt.s32.totalorder %v1555_v55, 12  ;;  %vm834_vm2 = vcmp.ge.s32.totalorder %v1555_v55, 4  ;;  %vm835_vm3 = vcmp.lt.s32.totalorder %v1555_v55, 8 }
  0x5e   :  { %1179 = vmatpush3.bf16.msra.mxu0 %v1376_v58  ;;  %vm1564_vm4 = vmand %vm845_vm0, %vm846_vm1  ;;  %vm823_vm5 = vcmp.lt.s32.totalorder %v1555_v55, 4 }
  0x5f   :  { %1180 = vmatprep.subr.bf16.mxu0 %v1378_v59  ;;  %1201 = vmatpush3.bf16.msra.mxu1 %v1377_v60  ;;  %vm1571_vm7 = vmand %vm834_vm2, %vm835_vm3 }
  0x60   :  { %1202 = vmatprep.subr.bf16.mxu1 %v1379_v61 }
  0x62   :  { %1181 = vmatpush3.bf16.msra.mxu0 %v1380_v62 }
  0x63   :  { %1182 = vmatprep.subr.bf16.mxu0 %v1382_v63  ;;  %1203 = vmatpush3.bf16.msra.mxu1 %v1381_v0 }
  0x64   :  { %1204 = vmatprep.subr.bf16.mxu1 %v1383_v1 }
  0x66   :  { %1183 = vmatpush3.bf16.msra.mxu0 %v1384_v2  ;;  %v872_v2 = vld [vmem:[#allocation7 + $0x68] sm:$0xff] }
  0x67   :  { %1184 = vmatprep.subr.bf16.mxu0 %v1386_v3  ;;  %1205 = vmatpush3.bf16.msra.mxu1 %v1385_v4  ;;  %v871_v3 = vld [vmem:[#allocation7 + $0x60] sm:$0xff]  ;;  %v870_v4 = vld [vmem:[#allocation7 + $0x58] sm:$0xff] }
  0x68   :  { %1206 = vmatprep.subr.bf16.mxu1 %v1387_v5  ;;  %v869_v5 = vld [vmem:[#allocation7 + $0x50] sm:$0xff] }
  0x6a   :  { %1185 = vmatpush3.bf16.msra.mxu0 %v1388_v6  ;;  %v868_v6 = vld [vmem:[#allocation7 + $0x48] sm:$0xff] }
  0x6b   :  { %1186 = vmatprep.subr.bf16.mxu0 %v1390_v7  ;;  %1207 = vmatpush3.bf16.msra.mxu1 %v1389_v8  ;;  %v867_v7 = vld [vmem:[#allocation7 + $0x40] sm:$0xff]  ;;  %v866_v8 = vld [vmem:[#allocation7 + $0x38] sm:$0xff] }
  0x6c   :  { %1208 = vmatprep.subr.bf16.mxu1 %v1391_v9  ;;  %v865_v9 = vld [vmem:[#allocation7 + $0x30] sm:$0xff] }
  0x6e   :  { %1187 = vmatpush3.bf16.msra.mxu0 %v1392_v10  ;;  %v864_v10 = vld [vmem:[#allocation7 + $0x28] sm:$0xff] }
  0x6f   :  { %1188 = vmatprep.subr.bf16.mxu0 %v1394_v11  ;;  %1209 = vmatpush3.bf16.msra.mxu1 %v1393_v12  ;;  %v863_v11 = vld [vmem:[#allocation7 + $0x20] sm:$0xff]  ;;  %v862_v12 = vld [vmem:[#allocation7 + $0x18] sm:$0xff] }
  0x70   :  { %1210 = vmatprep.subr.bf16.mxu1 %v1395_v13  ;;  %v861_v13 = vld [vmem:[#allocation7 + $0x10] sm:$0xff] }
  0x72   :  { %1189 = vmatpush3.bf16.msra.mxu0 %v1396_v15  ;;  %v859_v15 = vld [vmem:[#allocation7] sm:$0xff] }
  0x73   :  { %1211 = vmatpush3.bf16.msra.mxu1 %v1397_v18  ;;  %1252 = vmatprep.subr.mxu0 %v1498_v27  ;;  %v960_v18 = vld [vmem:[#allocation8 + $0x68] sm:$0xff] }
  0x74   :  { %1287 = vmatprep.subr.mxu1 %v1498_v27 }
  0x75   :  { %759 = vmatmul.mubr.bf16.vlgmr.msra.gmra.mxu0 %v130_v21  ;;  %v957_v21 = vld [vmem:[#allocation8 + $0x50] sm:$0xff] }
  0x76   :  { %799 = vmatmul.mubr.bf16.vlgmr.msra.gmra.mxu1 %v132_v25  ;;  %1253 = vmatpush3.msra.mxu0 %v874_v28 }
  0x77   :  { %1254 = vmatprep.subr.mxu0 %v1498_v27  ;;  %1284 = vmatprep.mubr.msk.f32.mxu0 %vm1499_vm8, %v1498_v27 }
  0x78   :  { %1255 = vmatpush3.msra.mxu0 %v873_v29  ;;  %1319 = vmatprep.mubr.msk.f32.mxu1 %vm1499_vm8, %v1498_v27 }
  0x79   :  { %1256 = vmatprep.subr.mxu0 %v1498_v27  ;;  %1288 = vmatpush3.msra.mxu1 %v962_v16 }
  0x7a   :  { %1257 = vmatpush3.msra.mxu0 %v872_v2  ;;  %1289 = vmatprep.subr.mxu1 %v1498_v27 }
  0x7b   :  { %1258 = vmatprep.subr.mxu0 %v1498_v27  ;;  %1290 = vmatpush3.msra.mxu1 %v961_v17 }
  0x7c   :  { %1259 = vmatpush3.msra.mxu0 %v871_v3  ;;  %1291 = vmatprep.subr.mxu1 %v1498_v27 }
  0x7d   :  { %1260 = vmatprep.subr.mxu0 %v1498_v27  ;;  %1292 = vmatpush3.msra.mxu1 %v960_v18 }
  0x7e   :  { %1261 = vmatpush3.msra.mxu0 %v870_v4  ;;  %1293 = vmatprep.subr.mxu1 %v1498_v27 }
  0x7f   :  { %1262 = vmatprep.subr.mxu0 %v1498_v27  ;;  %1294 = vmatpush3.msra.mxu1 %v959_v19 }
  0x80   :  { %1263 = vmatpush3.msra.mxu0 %v869_v5  ;;  %1295 = vmatprep.subr.mxu1 %v1498_v27 }
  0x81   :  { %1264 = vmatprep.subr.mxu0 %v1498_v27  ;;  %1296 = vmatpush3.msra.mxu1 %v958_v20 }
  0x82   :  { %1265 = vmatpush3.msra.mxu0 %v868_v6  ;;  %1297 = vmatprep.subr.mxu1 %v1498_v27 }
  0x83   :  { %1266 = vmatprep.subr.mxu0 %v1498_v27  ;;  %1298 = vmatpush3.msra.mxu1 %v957_v21 }
  0x84   :  { %1267 = vmatpush3.msra.mxu0 %v867_v7  ;;  %1299 = vmatprep.subr.mxu1 %v1498_v27 }
  0x85   :  { %1268 = vmatprep.subr.mxu0 %v1498_v27 }
  0x86   :  { %1269 = vmatpush3.msra.mxu0 %v866_v8 }
  0x87   :  { %1270 = vmatprep.subr.mxu0 %v1498_v27 }
  0x88   :  { %1271 = vmatpush3.msra.mxu0 %v865_v9 }
  0x89   :  { %1272 = vmatprep.subr.mxu0 %v1498_v27 }
  0x8a   :  { %1273 = vmatpush3.msra.mxu0 %v864_v10 }
  0x8b   :  { %1274 = vmatprep.subr.mxu0 %v1498_v27 }
  0x8c   :  { %1275 = vmatpush3.msra.mxu0 %v863_v11 }
  0x8d   :  { %1276 = vmatprep.subr.mxu0 %v1498_v27 }
  0x8e   :  { %1277 = vmatpush3.msra.mxu0 %v862_v12 }
  0x8f   :  { %1278 = vmatprep.subr.mxu0 %v1498_v27 }
  0x90   :  { %1279 = vmatpush3.msra.mxu0 %v861_v13 }
  0x91   :  { %1280 = vmatprep.subr.mxu0 %v1498_v27 }
  0x92   :  { %1281 = vmatpush3.msra.mxu0 %v860_v14 }
  0x93   :  { %1282 = vmatprep.subr.mxu0 %v1498_v27 }
  0x94   :  { %1283 = vmatpush3.msra.mxu0 %v859_v15 }
 0x115   :  { %v1146_v30 = vpop.f32.mrf.mxu0 }
 0x116   :  { %v1168_v31 = vpop.f32.mrf.mxu1 }
 0x117   :  { %v1147_v32 = vpop.f32.mrf.mxu0 }
 0x118   :  { %v1169_v33 = vpop.f32.mrf.mxu1  ;;  %v1148_v38 = vadd.f32 %v1147_v32, %v1146_v30 }
 0x119   :  { %v1149_v34 = vpop.f32.mrf.mxu0  ;;  %v1170_v39 = vadd.f32 %v1169_v33, %v1168_v31 }
 0x11a   :  { %v1171_v35 = vpop.f32.mrf.mxu1 }
 0x11b   :  { %v1150_v36 = vpop.f32.mrf.mxu0  ;;  %v721_v43 = vadd.f32 %v1170_v39, %v1148_v38  ;;  %v956_v35 = vld [vmem:[#allocation8 + $0x48] sm:$0xff]  ;;  %v953_v38 = vld [vmem:[#allocation8 + $0x30] sm:$0xff] }
 0x11c   :  { %v1172_v37 = vpop.f32.mrf.mxu1  ;;  %1300 = vmatpush3.msra.mxu1 %v956_v35  ;;  %v955_v36 = vld [vmem:[#allocation8 + $0x40] sm:$0xff]  ;;  %v952_v39 = vld [vmem:[#allocation8 + $0x28] sm:$0xff] }
 0x11d   :  { %1301 = vmatprep.subr.mxu1 %v1498_v27  ;;  %v954_v37 = vld [vmem:[#allocation8 + $0x38] sm:$0xff] }
 0x11e   :  { %1302 = vmatpush3.msra.mxu1 %v955_v36 }
 0x11f   :  { %1303 = vmatprep.subr.mxu1 %v1498_v27 }
 0x120   :  { %1304 = vmatpush3.msra.mxu1 %v954_v37 }
 0x121   :  { %1305 = vmatprep.subr.mxu1 %v1498_v27 }
 0x122   :  { %1306 = vmatpush3.msra.mxu1 %v953_v38 }
 0x123   :  { %1307 = vmatprep.subr.mxu1 %v1498_v27 }
 0x124   :  { %1308 = vmatpush3.msra.mxu1 %v952_v39 }
 0x125   :  { %1309 = vmatprep.subr.mxu1 %v1498_v27 }
 0x135   :  { %v1190_v40 = vpop.f32.mrf.mxu0 }
 0x136   :  { %v1212_v41 = vpop.f32.mrf.mxu1 }
 0x137   :  { %v1191_v42 = vpop.f32.mrf.mxu0 }
 0x138   :  { %v1192_v44 = vadd.f32 %v1191_v42, %v1190_v40  ;;  %v1213_v45 = vpop.f32.mrf.mxu1  ;;  %v951_v40 = vld [vmem:[#allocation8 + $0x20] sm:$0xff]  ;;  %v949_v42 = vld [vmem:[#allocation8 + $0x10] sm:$0xff] }
 0x139   :  { %v1193_v46 = vpop.f32.mrf.mxu0  ;;  %v1214_v48 = vadd.f32 %v1213_v45, %v1212_v41  ;;  %v950_v41 = vld [vmem:[#allocation8 + $0x18] sm:$0xff]  ;;  %1310 = vmatpush3.msra.mxu1 %v951_v40 }
 0x13a   :  { %v761_v47 = vadd.f32 %v1192_v44, %v721_v43  ;;  %v1215_v50 = vpop.f32.mrf.mxu1  ;;  %1311 = vmatprep.subr.mxu1 %v1498_v27  ;;  %v948_v43 = vld [vmem:[#allocation8 + $0x8] sm:$0xff]  ;;  %v947_v44 = vld [vmem:[#allocation8] sm:$0xff] }
 0x13b   :  { %v1194_v51 = vpop.f32.mrf.mxu0  ;;  %1312 = vmatpush3.msra.mxu1 %v950_v41 }
 0x13c   :  { %v801_v52 = vadd.f32 %v1214_v48, %v761_v47  ;;  %v1216_v53 = vpop.f32.mrf.mxu1  ;;  %1313 = vmatprep.subr.mxu1 %v1498_v27 }
 0x13d   :  { %1314 = vmatpush3.msra.mxu1 %v949_v42 }
 0x13e   :  { %v806_v54 = vadd.f32 %v801_v52, %v79_v49  ;;  %1315 = vmatprep.subr.mxu1 %v1498_v27 }
 0x13f   :  { %1316 = vmatpush3.msra.mxu1 %v948_v43 }
 0x140   :  { %807 = vst [vmem:[#allocation2] sm:$0x3] %v806_v54  ;;  %1317 = vmatprep.subr.mxu1 %v1498_v27 }
 0x141   :  { %1318 = vmatpush3.msra.mxu1 %v947_v44 }
 0x147   :  { %v811_v57 = vld [vmem:[#allocation2] sm:$0x3] }
 0x148   :  { %v1569_v24 = vadd.f32 %v1129_v56, %v811_v57 }
 0x14a   :  { %v850_v60 = vsel %vm1564_vm4, %v1569_v24, -1e+30  ;;  %v827_v61 = vsel %vm823_vm5, %v1569_v24, -1e+30  ;;  %v839_v0 = vsel %vm1571_vm7, %v1569_v24, -1e+30 }
 0x14b   :  { %v851_v62 = vsel %vm828_vm6, %v850_v60, -inf  ;;  %v829_v63 = vsel %vm828_vm6, %v827_v61, -inf  ;;  %v840_v1 = vsel %vm828_vm6, %v839_v0, -inf }
 0x14c   :  { %852 = vmax.xlane.f32.xlu1 %v851_v62  ;;  %830 = vmax.xlane.f32.xlu0 %v829_v63 }
 0x150   :  { %841 = vmax.xlane.f32.xlu0 %v840_v1 }
 0x1d5   :  { %v831_v22 = vpop.xlane.xlu0 %830  ;;  %v853_v23 = vpop.xlane.xlu1 %852 }
 0x1d6   :  { %v832_v26 = vsel %vm823_vm5, %v831_v22, 0.0  ;;  %v854_v30 = vsel %vm1564_vm4, %v853_v23, 0.0 }
 0x1d9   :  { %v842_v25 = vpop.xlane.xlu0 %841 }
 0x1da   :  { %v843_v28 = vsel %vm1571_vm7, %v842_v25, 0.0 }
 0x1db   :  { %v844_v29 = vadd.f32 %v843_v28, %v832_v26 }
 0x1dd   :  { %v855_v31 = vadd.f32 %v854_v30, %v844_v29 }
 0x1df   :  { %v856_v32 = vsub.f32 %v1569_v24, %v855_v31 }
 0x1e1   :  { %v857_v33 = vmul.f32 1.442695, %v856_v32 }
 0x1e3   :  { %1399 = vpow2.f32 %v857_v33 }
 0x1f0   :  { %v1400_v34 = vpop.eup %1399 }
 0x1f1   :  { %1285 = vmatmul.mubr.f32.vlgmr.msra.gmra.mxu0 %v1400_v34 }
 0x2b1   :  { %v941_v45 = vpop.f32.mrf.mxu0 }
 0x2b2   :  { %v942_v46 = vadd.f32 1e-30, %v941_v45 }
 0x2b3   :  { %v1286_v47 = vpop.f32.mrf.mxu0 }
 0x2b4   :  { %1401 = vrcp.f32 %v942_v46 }
 0x2c1   :  { %v1402_v48 = vpop.eup %1401 }
 0x2c2   :  { %v946_v49 = vmul.f32 %v1402_v48, %v1400_v34 }
 0x2c4   :  { %1320 = vmatmul.mubr.f32.vlgmr.msra.gmra.mxu1 %v946_v49 }
 0x384   :  { %v1029_v50 = vpop.f32.mrf.mxu1 }
 0x385   :  { %v1035_v51 = vsel %vm823_vm5, %v1029_v50, -1e+30 }
 0x386   :  { %v1321_v52 = vpop.f32.mrf.mxu1  ;;  %v1036_v53 = vsel %vm828_vm6, %v1035_v51, -inf }
 0x387   :  { %1037 = vmax.xlane.f32.xlu1 %v1036_v53 }
 0x410   :  { %v1038_v54 = vpop.xlane.xlu1 %1037 }
 0x411   :  { %vm1039_vm9 = vcmp.eq.f32.partialorder %v1035_v51, %v1038_v54 }
 0x412   :  { %v1040_v27 = vsel %vm1039_vm9, %v1555_v55, 128 }
 0x413   :  { %v1041_v56 = vsel %vm828_vm6, %v1040_v27, 2147483647 }
 0x414   :  { %v1043_v57 = vshra.s32 %v1041_v56, 16  ;;  %v1042_v24 = vand.u32 65535, %v1041_v56 }
 0x416   :  { %v1045_v58 = vcvt.s32.f32 %v1043_v57  ;;  %v1044_v60 = vcvt.s32.f32 %v1042_v24 }
 0x418   :  { %1046 = vmin.xlane.f32.xlu0 %v1045_v58 }
 0x4a1   :  { %v1047_v59 = vpop.xlane.xlu0 %1046 }
 0x4a2   :  { %vm1048_vm10 = vcmp.eq.f32.partialorder %v1045_v58, %v1047_v59  ;;  %v1053_v62 = vcvt.f32.s32 %v1047_v59 }
 0x4a3   :  { %v1049_v61 = vsel %vm1048_vm10, %v1044_v60, inf }
 0x4a4   :  { %1050 = vmin.xlane.f32.xlu1 %v1049_v61  ;;  %v1054_v0 = vshll.u32 %v1053_v62, 16 }
 0x52d   :  { %v1051_v63 = vpop.xlane.xlu1 %1050 }
 0x52e   :  { %v1052_v1 = vcvt.f32.s32 %v1051_v63 }
 0x530   :  { %v1055_v2 = vadd.s32 %v1054_v0, %v1052_v1 }
 0x532   :  { %1057 = vst.msk [vmem:[%s1637_s5] sm:$0x3] %vm1056_vm11, %v1055_v2 }
 0x533   :  { %1062 = vsyncpa [#allocation4], 1 }
 0x534   :  { %1063 = vsyncpa [#allocation6], 1 }
 0x535   :  { %1064 = vsyncpa [#allocation9], 1 }

</bundles_post_ra>
